<compile_context>
chip_gen: v7x
topology: tpu7x:2x2x1
jax: 0.10.0
libtpu: 0.0.40
codegen_flags: <defaults>
</compile_context>

<pallas_src>
import functools

import jax
import jax.numpy as jnp
from jax.experimental import pallas as pl
from jax.experimental.pallas import tpu as pltpu


# ----------------------------------------------------------------------------
# Kernel
# ----------------------------------------------------------------------------
def _critic_kernel(s_ref, a_ref,
                   was_ref, waa_ref, ba_ref,
                   wb_ref, bb_ref,
                   wc_ref, bc_ref,
                   out_ref):
    """Fused twin-Q MLP on one (TB, *) batch tile. Output lanes = [q1, q2]."""
    mxu_dtype = was_ref.dtype  # bf16 (fast path) or f32 (exact path)

    s = s_ref[...].astype(mxu_dtype)
    a = a_ref[...].astype(mxu_dtype)

    # Fused layers 1 & 4:  relu([state|action] @ [W1|W4] + [b1|b4])  -> (TB, 512)
    h = (jnp.dot(s, was_ref[...], preferred_element_type=jnp.float32)
         + jnp.dot(a, waa_ref[...], preferred_element_type=jnp.float32)
         + ba_ref[...])
    h = jnp.maximum(h, 0.0)

    # Fused layers 2 & 5:  relu(h @ blockdiag(W2, W5) + [b2|b5])     -> (TB, 512)
    h = jnp.dot(h.astype(mxu_dtype), wb_ref[...],
                preferred_element_type=jnp.float32) + bb_ref[...]
    h = jnp.maximum(h, 0.0)

    # Fused layers 3 & 6:  h @ blockdiag(W3, W6) + [b3|b6]           -> (TB, 2)
    q = jnp.dot(h.astype(mxu_dtype), wc_ref[...],
                preferred_element_type=jnp.float32) + bc_ref[...]

    out_ref[...] = q.astype(out_ref.dtype)


# ----------------------------------------------------------------------------
# Wrapper
# ----------------------------------------------------------------------------
@functools.partial(jax.jit, static_argnames=("block_b",))
def critic_forward(state, action, packed, *, block_b=512):
    """Twin-Q forward. Returns (q1, q2), each (B, 1) float32."""
    B, state_dim = state.shape
    action_dim = action.shape[1]
    h2 = packed["ba"].shape[1]          # 2 * hidden (= 512)

    # Batch tile: full batch if it is small, otherwise a sublane-aligned tile.
    tb = B if B <= block_b else block_b
    grid = (pl.cdiv(B, tb),)

    operands = (state, action,
                packed["was"], packed["waa"], packed["ba"],
                packed["wb"], packed["bb"],
                packed["wc"], packed["bc"])

    def batch_spec(ncols):
        return pl.BlockSpec((tb, ncols), lambda i: (i, 0))

    def resident_spec(arr):
        # Weights / biases: same full block every grid step -> stay in VMEM.
        return pl.BlockSpec(arr.shape, lambda i: (0, 0))

    in_specs = [
        batch_spec(state_dim),
        batch_spec(action_dim),
        resident_spec(packed["was"]),
        resident_spec(packed["waa"]),
        resident_spec(packed["ba"]),
        resident_spec(packed["wb"]),
        resident_spec(packed["bb"]),
        resident_spec(packed["wc"]),
        resident_spec(packed["bc"]),
    ]
    out_spec = pl.BlockSpec((tb, 2), lambda i: (i, 0))

    in_dim = state_dim + action_dim
    flops = 2 * B * (in_dim * h2 + h2 * h2 + h2 * 2)
    bytes_accessed = (sum(int(x.size) * x.dtype.itemsize for x in operands)
                      + B * 2 * 4)
    cost = pl.CostEstimate(flops=flops, transcendentals=0,
                           bytes_accessed=bytes_accessed)

    q = pl.pallas_call(
        _critic_kernel,
        grid=grid,
        in_specs=in_specs,
        out_specs=out_spec,
        out_shape=jax.ShapeDtypeStruct((B, 2), jnp.float32),
        compiler_params=pltpu.CompilerParams(
            dimension_semantics=("parallel",)),
        cost_estimate=cost,
    )(*operands)

    return q[:, 0:1], q[:, 1:2]


# ----------------------------------------------------------------------------
# Parameter init (PyTorch nn.Linear-style) and head-fusion packing
# ----------------------------------------------------------------------------
def init_critic_params(key, state_dim, action_dim, hidden=256):
    """Per-layer params, weights stored as (in, out), biases as (1, out)."""
    in_dim = state_dim + action_dim
    layer_dims = {"1": (in_dim, hidden), "2": (hidden, hidden), "3": (hidden, 1),
                  "4": (in_dim, hidden), "5": (hidden, hidden), "6": (hidden, 1)}
    params = {}
    for idx, (fan_in, fan_out) in layer_dims.items():
        bound = 1.0 / (fan_in ** 0.5)
        key, kw, kb = jax.random.split(key, 3)
        params[f"w{idx}"] = jax.random.uniform(
            kw, (fan_in, fan_out), jnp.float32, -bound, bound)
        params[f"b{idx}"] = jax.random.uniform(
            kb, (1, fan_out), jnp.float32, -bound, bound)
    return params


def pack_critic_params(params, state_dim, mxu_dtype=jnp.bfloat16):
    """Fuse the two Q-heads into shared matmul weights (done once)."""
    # Layer 1/4: horizontal concat, then split by input (state vs action rows).
    w_a = jnp.concatenate([params["w1"], params["w4"]], axis=1)    # (in, 512)
    b_a = jnp.concatenate([params["b1"], params["b4"]], axis=1)    # (1, 512)
    # Layer 2/5: block diagonal.
    z_h = jnp.zeros_like(params["w2"])
    w_b = jnp.concatenate(
        [jnp.concatenate([params["w2"], z_h], axis=1),
         jnp.concatenate([z_h, params["w5"]], axis=1)], axis=0)    # (512, 512)
    b_b = jnp.concatenate([params["b2"], params["b5"]], axis=1)    # (1, 512)
    # Layer 3/6: block diagonal -> lane-packed (q1, q2).
    z_o = jnp.zeros_like(params["w3"])
    w_c = jnp.concatenate(
        [jnp.concatenate([params["w3"], z_o], axis=1),
         jnp.concatenate([z_o, params["w6"]], axis=1)], axis=0)    # (512, 2)
    b_c = jnp.concatenate([params["b3"], params["b6"]], axis=1)    # (1, 2)

    return {
        "was": w_a[:state_dim].astype(mxu_dtype),
        "waa": w_a[state_dim:].astype(mxu_dtype),
        "ba": b_a.astype(jnp.float32),
        "wb": w_b.astype(mxu_dtype),
        "bb": b_b.astype(jnp.float32),
        "wc": w_c.astype(mxu_dtype),
        "bc": b_c.astype(jnp.float32),
    }


# ----------------------------------------------------------------------------
# Pure-JAX references
# ----------------------------------------------------------------------------
def unfused_reference(state, action, params):
    """Exact PyTorch-module semantics in f32."""
    sa = jnp.concatenate([state, action], axis=1)
    h = jnp.maximum(sa @ params["w1"] + params["b1"], 0.0)
    h = jnp.maximum(h @ params["w2"] + params["b2"], 0.0)
    q1 = h @ params["w3"] + params["b3"]
    g = jnp.maximum(sa @ params["w4"] + params["b4"], 0.0)
    g = jnp.maximum(g @ params["w5"] + params["b5"], 0.0)
    q2 = g @ params["w6"] + params["b6"]
    return q1, q2


def packed_reference(state, action, p):
    """Same fused math as the kernel (same dtypes), for bit-level-ish checks."""
    dt = p["was"].dtype
    h = (jnp.dot(state.astype(dt), p["was"], preferred_element_type=jnp.float32)
         + jnp.dot(action.astype(dt), p["waa"], preferred_element_type=jnp.float32)
         + p["ba"])
    h = jnp.maximum(h, 0.0)
    h = jnp.dot(h.astype(dt), p["wb"], preferred_element_type=jnp.float32) + p["bb"]
    h = jnp.maximum(h, 0.0)
    q = jnp.dot(h.astype(dt), p["wc"], preferred_element_type=jnp.float32) + p["bc"]
    return q[:, 0:1], q[:, 1:2]


# NOTE: Critic.Q1(state, action) is simply the first output of critic_forward.

# ----------------------------------------------------------------------------
# Self-test
# ----------------------------------------------------------------------------
if __name__ == "__main__":
    key = jax.random.PRNGKey(0)
    batch, state_dim, action_dim = 2, 12, 4

    k_p, k_s, k_a, k_s2, k_a2 = jax.random.split(key, 5)
    params = init_critic_params(k_p, state_dim, action_dim)
    state = jax.random.normal(k_s, (batch, state_dim), dtype=jnp.float32)
    action = jax.random.normal(k_a, (batch, action_dim), dtype=jnp.float32)

    q1_ref, q2_ref = unfused_reference(state, action, params)

    # --- exact-semantics path: f32 packed weights, tight tolerance ---------
    packed_f32 = pack_critic_params(params, state_dim, mxu_dtype=jnp.float32)
    q1_f32, q2_f32 = critic_forward(state, action, packed_f32)
    jax.block_until_ready((q1_f32, q2_f32))
    assert q1_f32.shape == (batch, 1) and q2_f32.shape == (batch, 1)
    assert jnp.allclose(q1_f32, q1_ref, atol=1e-4, rtol=1e-4)
    assert jnp.allclose(q2_f32, q2_ref, atol=1e-4, rtol=1e-4)

    # --- fast path: bf16 weights (MXU-native on v6e/v7x), f32 accumulation -
    packed_bf16 = pack_critic_params(params, state_dim, mxu_dtype=jnp.bfloat16)
    q1_bf, q2_bf = critic_forward(state, action, packed_bf16)
    jax.block_until_ready((q1_bf, q2_bf))
    q1_pr, q2_pr = packed_reference(state, action, packed_bf16)
    assert jnp.allclose(q1_bf, q1_pr, atol=1e-2, rtol=1e-2)
    assert jnp.allclose(q2_bf, q2_pr, atol=1e-2, rtol=1e-2)
    # bf16 path still tracks the f32 module semantics closely.
    assert jnp.allclose(q1_bf, q1_ref, atol=5e-2, rtol=5e-2)
    assert jnp.allclose(q2_bf, q2_ref, atol=5e-2, rtol=5e-2)

    # --- exercise the batch grid (multiple 512-row tiles, "parallel" axis) -
    big_b = 1024
    state_big = jax.random.normal(k_s2, (big_b, state_dim), dtype=jnp.float32)
    action_big = jax.random.normal(k_a2, (big_b, action_dim), dtype=jnp.float32)
    q1_big, q2_big = critic_forward(state_big, action_big, packed_bf16)
    jax.block_until_ready((q1_big, q2_big))
    q1_big_ref, q2_big_ref = packed_reference(state_big, action_big, packed_bf16)
    assert q1_big.shape == (big_b, 1) and q2_big.shape == (big_b, 1)
    assert jnp.allclose(q1_big, q1_big_ref, atol=1e-2, rtol=1e-2)
    assert jnp.allclose(q2_big, q2_big_ref, atol=1e-2, rtol=1e-2)

    print("KERNEL_OK")
</pallas_src>

<mosaic_0001>
module attributes {stable_mosaic.version = 11 : i64} {
  func.func @_critic_kernel(%arg0: i32, %arg1: memref<2x12xf32, #tpu.memory_space<vmem>>, %arg2: memref<2x4xf32, #tpu.memory_space<vmem>>, %arg3: memref<12x512xf32, #tpu.memory_space<vmem>>, %arg4: memref<4x512xf32, #tpu.memory_space<vmem>>, %arg5: memref<1x512xf32, #tpu.memory_space<vmem>>, %arg6: memref<512x512xf32, #tpu.memory_space<vmem>>, %arg7: memref<1x512xf32, #tpu.memory_space<vmem>>, %arg8: memref<512x2xf32, #tpu.memory_space<vmem>>, %arg9: memref<1x2xf32, #tpu.memory_space<vmem>>, %arg10: memref<2x2xf32, #tpu.memory_space<vmem>>) attributes {dimension_semantics = [#tpu.dimension_semantics<parallel>], iteration_bounds = array<i64: 1>, scalar_prefetch = 0 : i64, scratch_operands = 0 : i64, tpu.core_type = #tpu.core_type<tc>, window_params = [{transform_indices = @transform_0, window_bounds = array<i64: 2, 12>}, {transform_indices = @transform_1, window_bounds = array<i64: 2, 4>}, {pipeline_mode = #tpu.pipeline_mode<synchronous>, transform_indices = @transform_2, window_bounds = array<i64: 12, 512>}, {pipeline_mode = #tpu.pipeline_mode<synchronous>, transform_indices = @transform_3, window_bounds = array<i64: 4, 512>}, {pipeline_mode = #tpu.pipeline_mode<synchronous>, transform_indices = @transform_4, window_bounds = array<i64: 1, 512>}, {pipeline_mode = #tpu.pipeline_mode<synchronous>, transform_indices = @transform_5, window_bounds = array<i64: 512, 512>}, {pipeline_mode = #tpu.pipeline_mode<synchronous>, transform_indices = @transform_6, window_bounds = array<i64: 1, 512>}, {pipeline_mode = #tpu.pipeline_mode<synchronous>, transform_indices = @transform_7, window_bounds = array<i64: 512, 2>}, {pipeline_mode = #tpu.pipeline_mode<synchronous>, transform_indices = @transform_8, window_bounds = array<i64: 1, 2>}, {transform_indices = @transform_9, window_bounds = array<i64: 2, 2>}]} {
    %c0 = arith.constant 0 : index
    %c0_0 = arith.constant 0 : index
    %0 = vector.load %arg1[%c0, %c0_0] : memref<2x12xf32, #tpu.memory_space<vmem>>, vector<2x12xf32>
    %c0_1 = arith.constant 0 : index
    %c0_2 = arith.constant 0 : index
    %1 = vector.load %arg2[%c0_1, %c0_2] : memref<2x4xf32, #tpu.memory_space<vmem>>, vector<2x4xf32>
    %c0_3 = arith.constant 0 : index
    %c0_4 = arith.constant 0 : index
    %2 = vector.load %arg3[%c0_3, %c0_4] : memref<12x512xf32, #tpu.memory_space<vmem>>, vector<12x512xf32>
    %cst = arith.constant dense<0.000000e+00> : vector<2x512xf32>
    %3 = tpu.matmul %0, %2, %cst {dimension_numbers = #tpu.dot_dimension_numbers<[1], [0], [0], [1], [0, 0, 1, 1], [], []>} : vector<2x12xf32>, vector<12x512xf32>, vector<2x512xf32> -> vector<2x512xf32>
    %c0_5 = arith.constant 0 : index
    %c0_6 = arith.constant 0 : index
    %4 = vector.load %arg4[%c0_5, %c0_6] : memref<4x512xf32, #tpu.memory_space<vmem>>, vector<4x512xf32>
    %cst_7 = arith.constant dense<0.000000e+00> : vector<2x512xf32>
    %5 = tpu.matmul %1, %4, %cst_7 {dimension_numbers = #tpu.dot_dimension_numbers<[1], [0], [0], [1], [0, 0, 1, 1], [], []>} : vector<2x4xf32>, vector<4x512xf32>, vector<2x512xf32> -> vector<2x512xf32>
    %6 = arith.addf %3, %5 : vector<2x512xf32>
    %c0_8 = arith.constant 0 : index
    %c0_9 = arith.constant 0 : index
    %7 = vector.load %arg5[%c0_8, %c0_9] : memref<1x512xf32, #tpu.memory_space<vmem>>, vector<1x512xf32>
    %8 = vector.broadcast %7 : vector<1x512xf32> to vector<2x512xf32>
    %9 = arith.addf %6, %8 : vector<2x512xf32>
    %cst_10 = arith.constant 0.000000e+00 : f32
    %10 = vector.broadcast %cst_10 : f32 to vector<2x512xf32>
    %11 = arith.maximumf %9, %10 : vector<2x512xf32>
    %c0_11 = arith.constant 0 : index
    %c0_12 = arith.constant 0 : index
    %12 = vector.load %arg6[%c0_11, %c0_12] : memref<512x512xf32, #tpu.memory_space<vmem>>, vector<512x512xf32>
    %cst_13 = arith.constant dense<0.000000e+00> : vector<2x512xf32>
    %13 = tpu.matmul %11, %12, %cst_13 {dimension_numbers = #tpu.dot_dimension_numbers<[1], [0], [0], [1], [0, 0, 1, 1], [], []>} : vector<2x512xf32>, vector<512x512xf32>, vector<2x512xf32> -> vector<2x512xf32>
    %c0_14 = arith.constant 0 : index
    %c0_15 = arith.constant 0 : index
    %14 = vector.load %arg7[%c0_14, %c0_15] : memref<1x512xf32, #tpu.memory_space<vmem>>, vector<1x512xf32>
    %15 = vector.broadcast %14 : vector<1x512xf32> to vector<2x512xf32>
    %16 = arith.addf %13, %15 : vector<2x512xf32>
    %cst_16 = arith.constant 0.000000e+00 : f32
    %17 = vector.broadcast %cst_16 : f32 to vector<2x512xf32>
    %18 = arith.maximumf %16, %17 : vector<2x512xf32>
    %c0_17 = arith.constant 0 : index
    %c0_18 = arith.constant 0 : index
    %19 = vector.load %arg8[%c0_17, %c0_18] : memref<512x2xf32, #tpu.memory_space<vmem>>, vector<512x2xf32>
    %cst_19 = arith.constant dense<0.000000e+00> : vector<2x2xf32>
    %20 = tpu.matmul %18, %19, %cst_19 {dimension_numbers = #tpu.dot_dimension_numbers<[1], [0], [0], [1], [0, 0, 1, 1], [], []>} : vector<2x512xf32>, vector<512x2xf32>, vector<2x2xf32> -> vector<2x2xf32>
    %c0_20 = arith.constant 0 : index
    %c0_21 = arith.constant 0 : index
    %21 = vector.load %arg9[%c0_20, %c0_21] : memref<1x2xf32, #tpu.memory_space<vmem>>, vector<1x2xf32>
    %22 = vector.broadcast %21 : vector<1x2xf32> to vector<2x2xf32>
    %23 = arith.addf %20, %22 : vector<2x2xf32>
    %c0_22 = arith.constant 0 : index
    %c0_23 = arith.constant 0 : index
    %24 = vector.load %arg10[%c0_22, %c0_23] : memref<2x2xf32, #tpu.memory_space<vmem>>, vector<2x2xf32>
    tpu.vector_store %arg10[%c0_22, %c0_23], %23 {strides = array<i32>} : memref<2x2xf32, #tpu.memory_space<vmem>>, vector<2x2xf32>,
    return
  }
  func.func @transform_0(%arg0: i32) -> (i32, i32) {
    %c0_i32 = arith.constant 0 : i32
    %c0_i32_0 = arith.constant 0 : i32
    return %arg0, %c0_i32 : i32, i32
  }
  func.func @transform_1(%arg0: i32) -> (i32, i32) {
    %c0_i32 = arith.constant 0 : i32
    %c0_i32_0 = arith.constant 0 : i32
    return %arg0, %c0_i32 : i32, i32
  }
  func.func @transform_2(%arg0: i32) -> (i32, i32) {
    %c0_i32 = arith.constant 0 : i32
    %c0_i32_0 = arith.constant 0 : i32
    %c0_i32_1 = arith.constant 0 : i32
    return %c0_i32, %c0_i32_0 : i32, i32
  }
  func.func @transform_3(%arg0: i32) -> (i32, i32) {
    %c0_i32 = arith.constant 0 : i32
    %c0_i32_0 = arith.constant 0 : i32
    %c0_i32_1 = arith.constant 0 : i32
    return %c0_i32, %c0_i32_0 : i32, i32
  }
  func.func @transform_4(%arg0: i32) -> (i32, i32) {
    %c0_i32 = arith.constant 0 : i32
    %c0_i32_0 = arith.constant 0 : i32
    %c0_i32_1 = arith.constant 0 : i32
    return %c0_i32, %c0_i32_0 : i32, i32
  }
  func.func @transform_5(%arg0: i32) -> (i32, i32) {
    %c0_i32 = arith.constant 0 : i32
    %c0_i32_0 = arith.constant 0 : i32
    %c0_i32_1 = arith.constant 0 : i32
    return %c0_i32, %c0_i32_0 : i32, i32
  }
  func.func @transform_6(%arg0: i32) -> (i32, i32) {
    %c0_i32 = arith.constant 0 : i32
    %c0_i32_0 = arith.constant 0 : i32
    %c0_i32_1 = arith.constant 0 : i32
    return %c0_i32, %c0_i32_0 : i32, i32
  }
  func.func @transform_7(%arg0: i32) -> (i32, i32) {
    %c0_i32 = arith.constant 0 : i32
    %c0_i32_0 = arith.constant 0 : i32
    %c0_i32_1 = arith.constant 0 : i32
    return %c0_i32, %c0_i32_0 : i32, i32
  }
  func.func @transform_8(%arg0: i32) -> (i32, i32) {
    %c0_i32 = arith.constant 0 : i32
    %c0_i32_0 = arith.constant 0 : i32
    %c0_i32_1 = arith.constant 0 : i32
    return %c0_i32, %c0_i32_0 : i32, i32
  }
  func.func @transform_9(%arg0: i32) -> (i32, i32) {
    %c0_i32 = arith.constant 0 : i32
    %c0_i32_0 = arith.constant 0 : i32
    return %arg0, %c0_i32 : i32, i32
  }
}

</mosaic_0001>

<bundles_post_ra>
// kernel: critic_forward.1
= control target key start
LH: loop header
LB: loop body
LE: loop exit
PB: predicated region body
PF: predicated region fallthrough
CT: control target
= control target key end

     0   :  { %14 = vsyncpa [#allocation3], 0  ;;  %s1647_s30 = smov [#allocation2]   ;;  %s2000_s0 = inlined_call_operand.vmem [shape: f32[2,12], index: 0, kind: input, shape index: {}]   ;;  %s2001_s1 = inlined_call_operand.vmem [shape: f32[2,4], index: 1, kind: input, shape index: {}]   ;;  %s2002_s2 = inlined_call_operand.vmem [shape: f32[12,512], index: 2, kind: input, shape index: {}]   ;;  %s2003_s3 = inlined_call_operand.vmem [shape: f32[4,512], index: 3, kind: input, shape index: {}]   ;;  %s2004_s4 = inlined_call_operand.vmem [shape: f32[1,512], index: 4, kind: input, shape index: {}]   ;;  %s2005_s5 = inlined_call_operand.hbm [shape: f32[512,512], index: 5, kind: input, shape index: {}]   ;;  %s2006_s6 = inlined_call_operand.vmem [shape: f32[1,512], index: 6, kind: input, shape index: {}]   ;;  %s2007_s7 = inlined_call_operand.vmem [shape: f32[512,2], index: 7, kind: input, shape index: {}]   ;;  %s2008_s8 = inlined_call_operand.vmem [shape: f32[1,2], index: 8, kind: input, shape index: {}]   ;;  %s2009_s9 = inlined_call_operand.vmem [shape: f32[2,2], index: 9, kind: output, shape index: {}]  }
   0x1   :  { %s30_s10 = sshll.u32 %s1647_s30, 4  ;;  %s1623_s13 = scalar_lea.hbm %s2005_s5, 32768  ;;  %s31_s10 = int_to_ptr.vmem [resolvable:$true] %s30_s10 }
   0x2   :  { %p1624_p0 = scmp.ne.s32.totalorder %s2005_s5, %s1623_s13  ;;  %p1627_p1 = scmp.lt.u32.totalorder %s1623_s13, %s2005_s5 }
   0x4   :  { %p1629_p2 = pnand %p1627_p1, %p1624_p0 }
   0x6   :  { %1632 = shalt.err (!%p1629_p2)
}
   0x7   :  { %s1633_s18 = scalar_lea.vmem %s31_s10, 32768  ;;  %p1638_p4 = scmp.lt.s32.totalorder %s31_s10, %s31_s10 }
   0x8   :  { %p1634_p3 = scmp.ne.s32.totalorder %s31_s10, %s1633_s18  ;;  %p1639_p5 = scmp.lt.s32.totalorder %s1633_s18, %s1633_s18 }
   0xa   :  { %p1640_p6 = por %p1639_p5, %p1638_p4 }
   0xc   :  { %p1641_p7 = pnand %p1640_p6, %p1634_p3 }
   0xe   :  { %1644 = shalt.err (!%p1641_p7)
}
   0xf   :  { %s1648_s19 = smov 512   ;;  %s1649_s20 = smov 32  }
  0x10   :  { %36 = dma.hbm_to_vmem [thread:$0]  %s2005_s5, 32768, %s31_s10, [#allocation3], %s1648_s19, %s1648_s19, %s1649_s20  }
  0x11   :  { %1645 = dma.done.wait [#allocation3], 32768  }
  0x12   :  { %1646 = vsyncadd [#allocation3], 4294934528  ;;  %v1650_v0 = vmov 0.0   ;;  %vm66_vm0 = vcmask 1043456   ;;  %v56_v1 = vld [vmem:[%s2003_s3] sm:$0xff]  ;;  %v49_v2 = vld [vmem:[%s2002_s2 + $0x8] sm:$0xff] }
  0x13   :  { %139 = vmatprep.mubr.f32.mxu0 %v1650_v0  ;;  %210 = vmatprep.mubr.f32.mxu1 %v1650_v0  ;;  %vm1651_vm1 = vmmov 1   ;;  %v60_v4 = vcombine.high %v56_v1, %v56_v1  ;;  %v53_v5 = vld [vmem:[%s2002_s2 + $0x28] sm:$0xf]  ;;  %v48_v6 = vld [vmem:[%s2002_s2] sm:$0xff]  ;;  %vm62_vm3 = vcmask 31744   ;;  %v51_v12 = vld [vmem:[%s2002_s2 + $0x18] sm:$0xff] }
  0x14   :  { %vm1721_vm2 = vmpackc.low %vm66_vm0, %vm1651_vm1  ;;  %v52_v7 = vld [vmem:[%s2002_s2 + $0x20] sm:$0xf]  ;;  %v1272_v9 = vpack.c.bf16 %v53_v5, %v49_v2  ;;  %v57_v11 = vld [vmem:[%s2003_s3 + $0x8] sm:$0xff]  ;;  %vm217_vm4 = vcmask 97280   ;;  %vm1182_vm5 = vcmask 9216  }
  0x15   :  { %v47_v8 = vld [vmem:[%s2001_s1] sm:$0x3]  ;;  %v1275_v10 = vpack.c.bf16 %v52_v7, %v48_v6  ;;  %1189 = vmatprep.subr.msk.mxu0 %vm66_vm0, %v60_v4  ;;  %v61_v13 = vcombine.high %v57_v11, %v57_v11  ;;  %v55_v14 = vld [vmem:[%s2002_s2 + $0x38] sm:$0xf]  ;;  %v50_v15 = vld [vmem:[%s2002_s2 + $0x10] sm:$0xff] }
  0x16   :  { %v54_v16 = vld [vmem:[%s2002_s2 + $0x30] sm:$0xf]  ;;  %1190 = vmatpush1.msk.msra.mxu0 %vm66_vm0, %v56_v1  ;;  %v406_v17 = vld [vmem:[#allocation2 + $0x8] sm:$0xff]  ;;  %v408_v19 = vld [vmem:[#allocation2 + $0x18] sm:$0xff]  ;;  %v1278_v20 = vpack.c.bf16 %v55_v14, %v51_v12 }
  0x17   :  { %v410_v18 = vld [vmem:[#allocation2 + $0x28] sm:$0xff]  ;;  %1191 = vmatmul.mubr.msk.f32.vlgmr.msra.gmra.mrb[0].mxu0 %vm62_vm3, %v47_v8  ;;  %1274 = vmatprep.subr.msk.bf16.mxu0 %vm1721_vm2, %v1272_v9  ;;  %v412_v22 = vld [vmem:[#allocation2 + $0x38] sm:$0xff]  ;;  %v1281_v23 = vpack.c.bf16 %v54_v16, %v50_v15  ;;  %v405_v25 = vld [vmem:[#allocation2] sm:$0xff] }
  0x18   :  { %v1284_v21 = vpack.c.bf16 %v410_v18, %v406_v17  ;;  %1277 = vmatpush1.bf16.msk.msra.mxu0 %vm1721_vm2, %v1275_v10  ;;  %297 = vmatprep.mubr.f32.mxu0 %v1650_v0  ;;  %v1412_v24 = vpack.c.bf16 %v412_v22, %v408_v19  ;;  %v409_v26 = vld [vmem:[#allocation2 + $0x20] sm:$0xff]  ;;  %v414_v27 = vld [vmem:[#allocation2 + $0x48] sm:$0xff]  ;;  %v407_v31 = vld [vmem:[#allocation2 + $0x10] sm:$0xff] }
  0x19   :  { %1192 = vmatprep.subr.msk.mxu1 %vm66_vm0, %v61_v13  ;;  %v418_v28 = vld [vmem:[#allocation2 + $0x68] sm:$0xff]  ;;  %v46_v29 = vld [vmem:[%s2000_s0] sm:$0x3]  ;;  %v1286_v30 = vpack.c.bf16 %v409_v26, %v405_v25  ;;  %v411_v32 = vld [vmem:[#allocation2 + $0x30] sm:$0xff] }
  0x1a   :  { %1285 = vmatprep.subr.bf16.mxu0 %v1284_v21  ;;  %1193 = vmatpush1.msk.msra.mxu1 %vm66_vm0, %v57_v11  ;;  %v1288_v33 = vpack.c.bf16 %v418_v28, %v414_v27  ;;  %v416_v34 = vld [vmem:[#allocation2 + $0x58] sm:$0xff]  ;;  %v413_v35 = vld [vmem:[#allocation2 + $0x40] sm:$0xff]  ;;  %v422_v38 = vld [vmem:[#allocation2 + $0x88] sm:$0xff]  ;;  %v1414_v40 = vpack.c.bf16 %v411_v32, %v407_v31 }
  0x1b   :  { %1194 = vmatmul.mubr.msk.f32.vlgmr.msra.gmra.mrb[0].mxu1 %vm62_vm3, %v47_v8  ;;  %1280 = vmatprep.subr.msk.bf16.mxu1 %vm1721_vm2, %v1278_v20  ;;  %v417_v36 = vld [vmem:[#allocation2 + $0x60] sm:$0xff]  ;;  %v420_v37 = vld [vmem:[#allocation2 + $0x78] sm:$0xff]  ;;  %v426_v39 = vld [vmem:[#allocation2 + $0xa8] sm:$0xff] }
  0x1c   :  { %1283 = vmatpush1.bf16.msk.msra.mxu1 %vm1721_vm2, %v1281_v23  ;;  %368 = vmatprep.mubr.f32.mxu1 %v1650_v0  ;;  %v1290_v41 = vpack.c.bf16 %v417_v36, %v413_v35  ;;  %v415_v42 = vld [vmem:[#allocation2 + $0x50] sm:$0xff]  ;;  %v1416_v44 = vpack.c.bf16 %v420_v37, %v416_v34  ;;  %v1292_v45 = vpack.c.bf16 %v426_v39, %v422_v38  ;;  %v424_v46 = vld [vmem:[#allocation2 + $0x98] sm:$0xff]  ;;  %v421_v47 = vld [vmem:[#allocation2 + $0x80] sm:$0xff] }
  0x1d   :  { %1413 = vmatprep.subr.bf16.mxu1 %v1412_v24  ;;  %v419_v43 = vld [vmem:[#allocation2 + $0x70] sm:$0xff]  ;;  %v425_v48 = vld [vmem:[#allocation2 + $0xa0] sm:$0xff]  ;;  %v428_v49 = vld [vmem:[#allocation2 + $0xb8] sm:$0xff] }
  0x1e   :  { %v430_v50 = vld [vmem:[#allocation2 + $0xc8] sm:$0xff]  ;;  %v1418_v52 = vpack.c.bf16 %v419_v43, %v415_v42  ;;  %v1294_v53 = vpack.c.bf16 %v425_v48, %v421_v47  ;;  %v423_v54 = vld [vmem:[#allocation2 + $0x90] sm:$0xff]  ;;  %v1420_v56 = vpack.c.bf16 %v428_v49, %v424_v46  ;;  %v432_v58 = vld [vmem:[#allocation2 + $0xd8] sm:$0xff] }
  0x1f   :  { %1197 = vmatmul.mubr.msk.f32.vlgmr.msra.gmra.mrb[0].mxu0 %vm217_vm4, %v46_v29  ;;  %v434_v51 = vld [vmem:[#allocation2 + $0xe8] sm:$0xff]  ;;  %v427_v55 = vld [vmem:[#allocation2 + $0xb0] sm:$0xff]  ;;  %v429_v59 = vld [vmem:[#allocation2 + $0xc0] sm:$0xff] }
  0x20   :  { %1287 = vmatpush1.bf16.msra.mxu0 %v1286_v30  ;;  %v1296_v57 = vpack.c.bf16 %v434_v51, %v430_v50  ;;  %v433_v60 = vld [vmem:[#allocation2 + $0xe0] sm:$0xff]  ;;  %v436_v61 = vld [vmem:[#allocation2 + $0xf8] sm:$0xff]  ;;  %v438_v62 = vld [vmem:[#allocation2 + $0x108] sm:$0xff]  ;;  %v1422_v0 = vpack.c.bf16 %v427_v55, %v423_v54 }
  0x21   :  { %1289 = vmatprep.subr.bf16.mxu0 %v1288_v33  ;;  %v442_v63 = vld [vmem:[#allocation2 + $0x128] sm:$0xff]  ;;  %v1298_v1 = vpack.c.bf16 %v433_v60, %v429_v59  ;;  %v431_v2 = vld [vmem:[#allocation2 + $0xd0] sm:$0xff]  ;;  %v1424_v4 = vpack.c.bf16 %v436_v61, %v432_v58  ;;  %v440_v6 = vld [vmem:[#allocation2 + $0x118] sm:$0xff] }
  0x22   :  { %v435_v3 = vld [vmem:[#allocation2 + $0xf0] sm:$0xff]  ;;  %v1300_v5 = vpack.c.bf16 %v442_v63, %v438_v62  ;;  %v437_v7 = vld [vmem:[#allocation2 + $0x100] sm:$0xff]  ;;  %v444_v9 = vld [vmem:[#allocation2 + $0x138] sm:$0xff] }
  0x23   :  { %1200 = vmatmul.mubr.msk.f32.vlgmr.msra.gmra.mrb[0].mxu1 %vm217_vm4, %v46_v29  ;;  %v441_v8 = vld [vmem:[#allocation2 + $0x120] sm:$0xff]  ;;  %v446_v10 = vld [vmem:[#allocation2 + $0x148] sm:$0xff]  ;;  %v1426_v12 = vpack.c.bf16 %v435_v3, %v431_v2  ;;  %v439_v14 = vld [vmem:[#allocation2 + $0x110] sm:$0xff]  ;;  %v1428_v16 = vpack.c.bf16 %v444_v9, %v440_v6 }
  0x24   :  { %1415 = vmatpush1.bf16.msra.mxu1 %v1414_v40  ;;  %1291 = vmatpush1.bf16.msra.mxu0 %v1290_v41  ;;  %v450_v11 = vld [vmem:[#allocation2 + $0x168] sm:$0xff]  ;;  %v1302_v13 = vpack.c.bf16 %v441_v8, %v437_v7  ;;  %v443_v15 = vld [vmem:[#allocation2 + $0x130] sm:$0xff]  ;;  %v448_v18 = vld [vmem:[#allocation2 + $0x158] sm:$0xff] }
  0x25   :  { %1417 = vmatprep.subr.bf16.mxu1 %v1416_v44  ;;  %1293 = vmatprep.subr.bf16.mxu0 %v1292_v45  ;;  %v1304_v17 = vpack.c.bf16 %v450_v11, %v446_v10  ;;  %v445_v19 = vld [vmem:[#allocation2 + $0x140] sm:$0xff]  ;;  %v452_v21 = vld [vmem:[#allocation2 + $0x178] sm:$0xff]  ;;  %v454_v22 = vld [vmem:[#allocation2 + $0x188] sm:$0xff]  ;;  %v1430_v24 = vpack.c.bf16 %v443_v15, %v439_v14 }
  0x26   :  { %v449_v20 = vld [vmem:[#allocation2 + $0x160] sm:$0xff]  ;;  %v458_v23 = vld [vmem:[#allocation2 + $0x1a8] sm:$0xff]  ;;  %v447_v26 = vld [vmem:[#allocation2 + $0x150] sm:$0xff]  ;;  %v1432_v28 = vpack.c.bf16 %v452_v21, %v448_v18 }
  0x27   :  { %v1306_v25 = vpack.c.bf16 %v449_v20, %v445_v19  ;;  %v451_v27 = vld [vmem:[#allocation2 + $0x170] sm:$0xff]  ;;  %v1308_v29 = vpack.c.bf16 %v458_v23, %v454_v22  ;;  %v456_v30 = vld [vmem:[#allocation2 + $0x198] sm:$0xff]  ;;  %v453_v31 = vld [vmem:[#allocation2 + $0x180] sm:$0xff] }
  0x28   :  { %1419 = vmatpush1.bf16.msra.mxu1 %v1418_v52  ;;  %1295 = vmatpush1.bf16.msra.mxu0 %v1294_v53  ;;  %v457_v32 = vld [vmem:[#allocation2 + $0x1a0] sm:$0xff]  ;;  %v460_v33 = vld [vmem:[#allocation2 + $0x1b8] sm:$0xff]  ;;  %v462_v34 = vld [vmem:[#allocation2 + $0x1c8] sm:$0xff]  ;;  %v1434_v36 = vpack.c.bf16 %v451_v27, %v447_v26 }
  0x29   :  { %1421 = vmatprep.subr.bf16.mxu1 %v1420_v56  ;;  %1297 = vmatprep.subr.bf16.mxu0 %v1296_v57  ;;  %v466_v35 = vld [vmem:[#allocation2 + $0x1e8] sm:$0xff]  ;;  %v1310_v37 = vpack.c.bf16 %v457_v32, %v453_v31  ;;  %v455_v38 = vld [vmem:[#allocation2 + $0x190] sm:$0xff]  ;;  %v1436_v40 = vpack.c.bf16 %v460_v33, %v456_v30  ;;  %v464_v42 = vld [vmem:[#allocation2 + $0x1d8] sm:$0xff] }
  0x2a   :  { %v459_v39 = vld [vmem:[#allocation2 + $0x1b0] sm:$0xff]  ;;  %v1312_v41 = vpack.c.bf16 %v466_v35, %v462_v34  ;;  %v461_v43 = vld [vmem:[#allocation2 + $0x1c0] sm:$0xff]  ;;  %v468_v45 = vld [vmem:[#allocation2 + $0x1f8] sm:$0xff] }
  0x2b   :  { %v465_v44 = vld [vmem:[#allocation2 + $0x1e0] sm:$0xff]  ;;  %v470_v46 = vld [vmem:[#allocation2 + $0x208] sm:$0xff]  ;;  %v1438_v48 = vpack.c.bf16 %v459_v39, %v455_v38  ;;  %v463_v50 = vld [vmem:[#allocation2 + $0x1d0] sm:$0xff]  ;;  %v1440_v52 = vpack.c.bf16 %v468_v45, %v464_v42 }
  0x2c   :  { %1423 = vmatpush1.bf16.msra.mxu1 %v1422_v0  ;;  %1299 = vmatpush1.bf16.msra.mxu0 %v1298_v1  ;;  %v474_v47 = vld [vmem:[#allocation2 + $0x228] sm:$0xff]  ;;  %v1314_v49 = vpack.c.bf16 %v465_v44, %v461_v43  ;;  %v467_v51 = vld [vmem:[#allocation2 + $0x1f0] sm:$0xff]  ;;  %v472_v54 = vld [vmem:[#allocation2 + $0x218] sm:$0xff] }
  0x2d   :  { %1425 = vmatprep.subr.bf16.mxu1 %v1424_v4  ;;  %1301 = vmatprep.subr.bf16.mxu0 %v1300_v5  ;;  %v1316_v53 = vpack.c.bf16 %v474_v47, %v470_v46  ;;  %v469_v55 = vld [vmem:[#allocation2 + $0x200] sm:$0xff]  ;;  %v476_v57 = vld [vmem:[#allocation2 + $0x238] sm:$0xff]  ;;  %v478_v58 = vld [vmem:[#allocation2 + $0x248] sm:$0xff]  ;;  %v1442_v60 = vpack.c.bf16 %v467_v51, %v463_v50 }
  0x2e   :  { %v473_v56 = vld [vmem:[#allocation2 + $0x220] sm:$0xff]  ;;  %v482_v59 = vld [vmem:[#allocation2 + $0x268] sm:$0xff]  ;;  %v471_v62 = vld [vmem:[#allocation2 + $0x210] sm:$0xff]  ;;  %v1444_v0 = vpack.c.bf16 %v476_v57, %v472_v54 }
  0x2f   :  { %v1318_v61 = vpack.c.bf16 %v473_v56, %v469_v55  ;;  %v475_v63 = vld [vmem:[#allocation2 + $0x230] sm:$0xff]  ;;  %v1320_v1 = vpack.c.bf16 %v482_v59, %v478_v58  ;;  %v480_v2 = vld [vmem:[#allocation2 + $0x258] sm:$0xff]  ;;  %v477_v3 = vld [vmem:[#allocation2 + $0x240] sm:$0xff] }
  0x30   :  { %1427 = vmatpush1.bf16.msra.mxu1 %v1426_v12  ;;  %1303 = vmatpush1.bf16.msra.mxu0 %v1302_v13  ;;  %v481_v4 = vld [vmem:[#allocation2 + $0x260] sm:$0xff]  ;;  %v484_v5 = vld [vmem:[#allocation2 + $0x278] sm:$0xff]  ;;  %v486_v6 = vld [vmem:[#allocation2 + $0x288] sm:$0xff]  ;;  %v1446_v8 = vpack.c.bf16 %v475_v63, %v471_v62 }
  0x31   :  { %1429 = vmatprep.subr.bf16.mxu1 %v1428_v16  ;;  %1305 = vmatprep.subr.bf16.mxu0 %v1304_v17  ;;  %v490_v7 = vld [vmem:[#allocation2 + $0x2a8] sm:$0xff]  ;;  %v1322_v9 = vpack.c.bf16 %v481_v4, %v477_v3  ;;  %v479_v10 = vld [vmem:[#allocation2 + $0x250] sm:$0xff]  ;;  %v1448_v12 = vpack.c.bf16 %v484_v5, %v480_v2  ;;  %v488_v14 = vld [vmem:[#allocation2 + $0x298] sm:$0xff] }
  0x32   :  { %v483_v11 = vld [vmem:[#allocation2 + $0x270] sm:$0xff]  ;;  %v1324_v13 = vpack.c.bf16 %v490_v7, %v486_v6  ;;  %v485_v15 = vld [vmem:[#allocation2 + $0x280] sm:$0xff]  ;;  %v492_v17 = vld [vmem:[#allocation2 + $0x2b8] sm:$0xff] }
  0x33   :  { %v489_v16 = vld [vmem:[#allocation2 + $0x2a0] sm:$0xff]  ;;  %v494_v18 = vld [vmem:[#allocation2 + $0x2c8] sm:$0xff]  ;;  %v1450_v20 = vpack.c.bf16 %v483_v11, %v479_v10  ;;  %v487_v22 = vld [vmem:[#allocation2 + $0x290] sm:$0xff] }
  0x34   :  { %1431 = vmatpush1.bf16.msra.mxu1 %v1430_v24  ;;  %1307 = vmatpush1.bf16.msra.mxu0 %v1306_v25  ;;  %v498_v19 = vld [vmem:[#allocation2 + $0x2e8] sm:$0xff]  ;;  %v1326_v21 = vpack.c.bf16 %v489_v16, %v485_v15  ;;  %v491_v23 = vld [vmem:[#allocation2 + $0x2b0] sm:$0xff]  ;;  %v1452_v24 = vpack.c.bf16 %v492_v17, %v488_v14  ;;  %v496_v26 = vld [vmem:[#allocation2 + $0x2d8] sm:$0xff] }
  0x35   :  { %1433 = vmatprep.subr.bf16.mxu1 %v1432_v28  ;;  %1309 = vmatprep.subr.bf16.mxu0 %v1308_v29  ;;  %v1328_v25 = vpack.c.bf16 %v498_v19, %v494_v18  ;;  %v493_v27 = vld [vmem:[#allocation2 + $0x2c0] sm:$0xff]  ;;  %v500_v29 = vld [vmem:[#allocation2 + $0x2f8] sm:$0xff]  ;;  %v502_v30 = vld [vmem:[#allocation2 + $0x308] sm:$0xff]  ;;  %v1454_v32 = vpack.c.bf16 %v491_v23, %v487_v22 }
  0x36   :  { %v497_v28 = vld [vmem:[#allocation2 + $0x2e0] sm:$0xff]  ;;  %v506_v31 = vld [vmem:[#allocation2 + $0x328] sm:$0xff]  ;;  %v495_v34 = vld [vmem:[#allocation2 + $0x2d0] sm:$0xff] }
  0x37   :  { %v1330_v33 = vpack.c.bf16 %v497_v28, %v493_v27  ;;  %v499_v35 = vld [vmem:[#allocation2 + $0x2f0] sm:$0xff]  ;;  %v504_v38 = vld [vmem:[#allocation2 + $0x318] sm:$0xff]  ;;  %v501_v39 = vld [vmem:[#allocation2 + $0x300] sm:$0xff] }
  0x38   :  { %1435 = vmatpush1.bf16.msra.mxu1 %v1434_v36  ;;  %1311 = vmatpush1.bf16.msra.mxu0 %v1310_v37  ;;  %v1456_v36 = vpack.c.bf16 %v500_v29, %v496_v26  ;;  %v1332_v37 = vpack.c.bf16 %v506_v31, %v502_v30  ;;  %v510_v42 = vld [vmem:[#allocation2 + $0x348] sm:$0xff]  ;;  %v1458_v44 = vpack.c.bf16 %v499_v35, %v495_v34  ;;  %v503_v46 = vld [vmem:[#allocation2 + $0x310] sm:$0xff]  ;;  %v512_v50 = vld [vmem:[#allocation2 + $0x358] sm:$0xff]  ;;  %v377_v26 = vlaneseq }
  0x39   :  { %1437 = vmatprep.subr.bf16.mxu1 %v1436_v40  ;;  %1313 = vmatprep.subr.bf16.mxu0 %v1312_v41  ;;  %v505_v40 = vld [vmem:[#allocation2 + $0x320] sm:$0xff]  ;;  %v508_v41 = vld [vmem:[#allocation2 + $0x338] sm:$0xff]  ;;  %v514_v43 = vld [vmem:[#allocation2 + $0x368] sm:$0xff] }
  0x3a   :  { %v1334_v45 = vpack.c.bf16 %v505_v40, %v501_v39  ;;  %v507_v47 = vld [vmem:[#allocation2 + $0x330] sm:$0xff]  ;;  %v509_v51 = vld [vmem:[#allocation2 + $0x340] sm:$0xff]  ;;  %v518_v54 = vld [vmem:[#allocation2 + $0x388] sm:$0xff]  ;;  %v1771_v27 = vshrl.u32 %v377_v26, 7 }
  0x3b   :  { %v522_v55 = vld [vmem:[#allocation2 + $0x3a8] sm:$0xff]  ;;  %v1462_v56 = vpack.c.bf16 %v507_v47, %v503_v46  ;;  %v511_v58 = vld [vmem:[#allocation2 + $0x350] sm:$0xff]  ;;  %v517_v62 = vld [vmem:[#allocation2 + $0x380] sm:$0xff] }
  0x3c   :  { %1439 = vmatpush1.bf16.msra.mxu1 %v1438_v48  ;;  %1315 = vmatpush1.bf16.msra.mxu0 %v1314_v49  ;;  %v1460_v48 = vpack.c.bf16 %v508_v41, %v504_v38  ;;  %v1336_v49 = vpack.c.bf16 %v514_v43, %v510_v42  ;;  %v521_v63 = vld [vmem:[#allocation2 + $0x3a0] sm:$0xff]  ;;  %v519_v5 = vld [vmem:[#allocation2 + $0x390] sm:$0xff]  ;;  %v528_v10 = vld [vmem:[#allocation2 + $0x3d8] sm:$0xff]  ;;  %v379_v28 = vsub.s32 0, %v1771_v27  ;;  %v383_v30 = vsub.s32 1, %v1771_v27 }
  0x3d   :  { %1441 = vmatprep.subr.bf16.mxu1 %v1440_v52  ;;  %1317 = vmatprep.subr.bf16.mxu0 %v1316_v53  ;;  %v513_v52 = vld [vmem:[#allocation2 + $0x360] sm:$0xff]  ;;  %v516_v53 = vld [vmem:[#allocation2 + $0x378] sm:$0xff]  ;;  %v1342_v3 = vpack.c.bf16 %v521_v63, %v517_v62  ;;  %v523_v6 = vld [vmem:[#allocation2 + $0x3b0] sm:$0xff]  ;;  %v391_v34 = vsub.s32 3, %v1771_v27 }
  0x3e   :  { %v1338_v57 = vpack.c.bf16 %v513_v52, %v509_v51  ;;  %v1464_v59 = vpack.c.bf16 %v516_v53, %v512_v50  ;;  %v1470_v7 = vpack.c.bf16 %v523_v6, %v519_v5  ;;  %v529_v14 = vld [vmem:[#allocation2 + $0x3e0] sm:$0xff]  ;;  %v527_v17 = vld [vmem:[#allocation2 + $0x3d0] sm:$0xff]  ;;  %v536_v22 = vld [vmem:[#allocation2 + $0x418] sm:$0xff] }
  0x3f   :  { %v531_v18 = vld [vmem:[#allocation2 + $0x3f0] sm:$0xff]  ;;  %v375_v29 = vld [vmem:[%s2004_s4] sm:$0xf]  ;;  %v542_v42 = vld [vmem:[#allocation2 + $0x448] sm:$0xff] }
  0x40   :  { %1443 = vmatpush1.bf16.msra.mxu1 %v1442_v60  ;;  %1319 = vmatpush1.bf16.msra.mxu0 %v1318_v61  ;;  %v515_v60 = vld [vmem:[#allocation2 + $0x370] sm:$0xff]  ;;  %v1340_v61 = vpack.c.bf16 %v522_v55, %v518_v54  ;;  %v1474_v19 = vpack.c.bf16 %v531_v18, %v527_v17  ;;  %v380_v31 = vrot.slane %v375_v29, %v379_v28  ;;  %v544_v46 = vld [vmem:[#allocation2 + $0x458] sm:$0xff]  ;;  %v541_v52 = vld [vmem:[#allocation2 + $0x440] sm:$0xff] }
  0x41   :  { %1445 = vmatprep.subr.bf16.mxu1 %v1444_v0  ;;  %1321 = vmatprep.subr.bf16.mxu0 %v1320_v1  ;;  %v520_v0 = vld [vmem:[#allocation2 + $0x398] sm:$0xff]  ;;  %v1466_v2 = vpack.c.bf16 %v515_v60, %v511_v58  ;;  %v535_v40 = vld [vmem:[#allocation2 + $0x410] sm:$0xff]  ;;  %v545_v53 = vld [vmem:[#allocation2 + $0x460] sm:$0xff] }
  0x42   :  { %v524_v1 = vld [vmem:[#allocation2 + $0x3b8] sm:$0xff]  ;;  %v539_v41 = vld [vmem:[#allocation2 + $0x430] sm:$0xff]  ;;  %v550_v60 = vld [vmem:[#allocation2 + $0x488] sm:$0xff] }
  0x43   :  { %v1468_v4 = vpack.c.bf16 %v524_v1, %v520_v0  ;;  %v548_v47 = vld [vmem:[#allocation2 + $0x478] sm:$0xff]  ;;  %v1478_v51 = vpack.c.bf16 %v539_v41, %v535_v40  ;;  %v543_v58 = vld [vmem:[#allocation2 + $0x450] sm:$0xff]  ;;  %v554_v63 = vld [vmem:[#allocation2 + $0x4a8] sm:$0xff] }
  0x44   :  { %1447 = vmatpush1.bf16.msra.mxu1 %v1446_v8  ;;  %1323 = vmatpush1.bf16.msra.mxu0 %v1322_v9  ;;  %v526_v8 = vld [vmem:[#allocation2 + $0x3c8] sm:$0xff]  ;;  %v552_v0 = vld [vmem:[#allocation2 + $0x498] sm:$0xff]  ;;  %v549_v5 = vld [vmem:[#allocation2 + $0x480] sm:$0xff] }
  0x45   :  { %1449 = vmatprep.subr.bf16.mxu1 %v1448_v12  ;;  %1325 = vmatprep.subr.bf16.mxu0 %v1324_v13  ;;  %v530_v9 = vld [vmem:[#allocation2 + $0x3e8] sm:$0xff]  ;;  %v532_v12 = vld [vmem:[#allocation2 + $0x3f8] sm:$0xff]  ;;  %v525_v13 = vld [vmem:[#allocation2 + $0x3c0] sm:$0xff] }
  0x46   :  { %v1344_v11 = vpack.c.bf16 %v530_v9, %v526_v8  ;;  %v1472_v15 = vpack.c.bf16 %v532_v12, %v528_v10  ;;  %v1346_v16 = vpack.c.bf16 %v529_v14, %v525_v13  ;;  %v556_v1 = vld [vmem:[#allocation2 + $0x4b8] sm:$0xff]  ;;  %v553_v6 = vld [vmem:[#allocation2 + $0x4a0] sm:$0xff]  ;;  %v1356_v8 = vpack.c.bf16 %v554_v63, %v550_v60  ;;  %v551_v10 = vld [vmem:[#allocation2 + $0x490] sm:$0xff] }
  0x47   :  { %v1484_v9 = vpack.c.bf16 %v556_v1, %v552_v0  ;;  %v558_v12 = vld [vmem:[#allocation2 + $0x4c8] sm:$0xff]  ;;  %v560_v14 = vld [vmem:[#allocation2 + $0x4d8] sm:$0xff]  ;;  %v557_v18 = vld [vmem:[#allocation2 + $0x4c0] sm:$0xff] }
  0x48   :  { %1451 = vmatpush1.bf16.msra.mxu1 %v1450_v20  ;;  %1327 = vmatpush1.bf16.msra.mxu0 %v1326_v21  ;;  %v534_v20 = vld [vmem:[#allocation2 + $0x408] sm:$0xff]  ;;  %v568_v26 = vld [vmem:[#allocation2 + $0x518] sm:$0xff]  ;;  %v571_v40 = vld [vmem:[#allocation2 + $0x530] sm:$0xff] }
  0x49   :  { %1453 = vmatprep.subr.bf16.mxu1 %v1452_v24  ;;  %1329 = vmatprep.subr.bf16.mxu0 %v1328_v25  ;;  %v538_v21 = vld [vmem:[#allocation2 + $0x428] sm:$0xff]  ;;  %v540_v24 = vld [vmem:[#allocation2 + $0x438] sm:$0xff]  ;;  %v585_v60 = vld [vmem:[#allocation2 + $0x5a0] sm:$0xff] }
  0x4a   :  { %v1348_v23 = vpack.c.bf16 %v538_v21, %v534_v20  ;;  %v1476_v25 = vpack.c.bf16 %v540_v24, %v536_v22  ;;  %v562_v13 = vld [vmem:[#allocation2 + $0x4e8] sm:$0xff]  ;;  %v559_v22 = vld [vmem:[#allocation2 + $0x4d0] sm:$0xff] }
  0x4b   :  { %v1360_v20 = vpack.c.bf16 %v562_v13, %v558_v12  ;;  %v566_v24 = vld [vmem:[#allocation2 + $0x508] sm:$0xff]  ;;  %v583_v0 = vld [vmem:[#allocation2 + $0x590] sm:$0xff] }
  0x4c   :  { %1455 = vmatpush1.bf16.msra.mxu1 %v1454_v32  ;;  %1331 = vmatpush1.bf16.msra.mxu0 %v1330_v33  ;;  %v387_v32 = vsub.s32 2, %v1771_v27  ;;  %v384_v33 = vrot.slane %v375_v29, %v383_v30  ;;  %v574_v41 = vld [vmem:[#allocation2 + $0x548] sm:$0xff]  ;;  %v587_v1 = vld [vmem:[#allocation2 + $0x5b0] sm:$0xff]  ;;  %v1201_v27 = vld [vmem:[%s2008_s8] ss:$0 sm:$0xff] }
  0x4d   :  { %1457 = vmatprep.subr.bf16.mxu1 %v1456_v36  ;;  %1333 = vmatprep.subr.bf16.mxu0 %v1332_v37  ;;  %v533_v36 = vld [vmem:[#allocation2 + $0x400] sm:$0xff]  ;;  %v591_v12 = vld [vmem:[#allocation2 + $0x5d0] sm:$0xff] }
  0x4e   :  { %v537_v37 = vld [vmem:[#allocation2 + $0x420] sm:$0xff]  ;;  %v388_v43 = vrot.slane %v375_v29, %v387_v32  ;;  %v595_v13 = vld [vmem:[#allocation2 + $0x5f0] sm:$0xff] }
  0x4f   :  { %v1350_v50 = vpack.c.bf16 %v537_v37, %v533_v36  ;;  %v569_v36 = vld [vmem:[#allocation2 + $0x520] sm:$0xff] }
  0x50   :  { %1459 = vmatpush1.bf16.msra.mxu1 %v1458_v44  ;;  %1335 = vmatpush1.bf16.msra.mxu0 %v1334_v45  ;;  %v546_v45 = vld [vmem:[#allocation2 + $0x468] sm:$0xff] }
  0x51   :  { %1461 = vmatprep.subr.bf16.mxu1 %v1460_v48  ;;  %1337 = vmatprep.subr.bf16.mxu0 %v1336_v49  ;;  %v392_v48 = vrot.slane %v375_v29, %v391_v34  ;;  %v572_v29 = vld [vmem:[#allocation2 + $0x538] sm:$0xff] }
  0x54   :  { %1463 = vmatpush1.bf16.msra.mxu1 %v1462_v56  ;;  %1339 = vmatpush1.bf16.msra.mxu0 %v1338_v57  ;;  %v1352_v56 = vpack.c.bf16 %v546_v45, %v542_v42  ;;  %v1480_v57 = vpack.c.bf16 %v548_v47, %v544_v46  ;;  %v578_v42 = vld [vmem:[#allocation2 + $0x568] sm:$0xff]  ;;  %v573_v47 = vld [vmem:[#allocation2 + $0x540] sm:$0xff] }
  0x55   :  { %1465 = vmatprep.subr.bf16.mxu1 %v1464_v59  ;;  %1341 = vmatprep.subr.bf16.mxu0 %v1340_v61  ;;  %v547_v59 = vld [vmem:[#allocation2 + $0x470] sm:$0xff] }
  0x58   :  { %1467 = vmatpush1.bf16.msra.mxu1 %v1466_v2  ;;  %1343 = vmatpush1.bf16.msra.mxu0 %v1342_v3  ;;  %v1354_v3 = vpack.c.bf16 %v545_v53, %v541_v52  ;;  %v579_v52 = vld [vmem:[#allocation2 + $0x570] sm:$0xff]  ;;  %v582_v53 = vld [vmem:[#allocation2 + $0x588] sm:$0xff] }
  0x59   :  { %1469 = vmatprep.subr.bf16.mxu1 %v1468_v4  ;;  %1345 = vmatprep.subr.bf16.mxu0 %v1344_v11  ;;  %v1482_v4 = vpack.c.bf16 %v547_v59, %v543_v58  ;;  %v555_v11 = vld [vmem:[#allocation2 + $0x4b0] sm:$0xff]  ;;  %v581_v59 = vld [vmem:[#allocation2 + $0x580] sm:$0xff] }
  0x5a   :  { %v1486_v17 = vpack.c.bf16 %v555_v11, %v551_v10 }
  0x5c   :  { %1471 = vmatpush1.bf16.msra.mxu1 %v1470_v7  ;;  %1347 = vmatpush1.bf16.msra.mxu0 %v1346_v16  ;;  %v1358_v16 = vpack.c.bf16 %v553_v6, %v549_v5  ;;  %v596_v5 = vld [vmem:[#allocation2 + $0x5f8] sm:$0xff]  ;;  %v1374_v6 = vpack.c.bf16 %v585_v60, %v581_v59 }
  0x5d   :  { %1473 = vmatprep.subr.bf16.mxu1 %v1472_v15  ;;  %1349 = vmatprep.subr.bf16.mxu0 %v1348_v23  ;;  %v564_v15 = vld [vmem:[#allocation2 + $0x4f8] sm:$0xff]  ;;  %v563_v23 = vld [vmem:[#allocation2 + $0x4f0] sm:$0xff] }
  0x5e   :  { %v1488_v21 = vpack.c.bf16 %v564_v15, %v560_v14  ;;  %v598_v14 = vld [vmem:[#allocation2 + $0x608] sm:$0xff] }
  0x5f   :  { %v602_v15 = vld [vmem:[#allocation2 + $0x628] sm:$0xff] }
  0x60   :  { %1475 = vmatpush1.bf16.msra.mxu1 %v1474_v19  ;;  %v561_v19 = vld [vmem:[#allocation2 + $0x4e0] sm:$0xff] }
  0x61   :  { %1477 = vmatprep.subr.bf16.mxu1 %v1476_v25  ;;  %v570_v25 = vld [vmem:[#allocation2 + $0x528] sm:$0xff] }
  0x62   :  { %v1364_v37 = vpack.c.bf16 %v570_v25, %v566_v24  ;;  %v599_v24 = vld [vmem:[#allocation2 + $0x610] sm:$0xff] }
  0x63   :  { %v603_v25 = vld [vmem:[#allocation2 + $0x630] sm:$0xff] }
  0xf2   :  { %v299_v35 = vpop.f32.mrb[0].mxu0 }
  0xf3   :  { %v397_v38 = vadd.f32 %v380_v31, %v299_v35  ;;  %v301_v39 = vpop.f32.mrb[1].mxu0  ;;  %v1362_v31 = vpack.c.bf16 %v561_v19, %v557_v18  ;;  %v565_v35 = vld [vmem:[#allocation2 + $0x500] sm:$0xff]  ;;  %v1506_v19 = vpack.c.bf16 %v595_v13, %v591_v12 }
  0xf4   :  { %v398_v44 = vadd.f32 %v384_v33, %v301_v39  ;;  %v1490_v33 = vpack.c.bf16 %v563_v23, %v559_v22  ;;  %v567_v39 = vld [vmem:[#allocation2 + $0x510] sm:$0xff]  ;;  %v1366_v45 = vpack.c.bf16 %v569_v36, %v565_v35  ;;  %v1380_v22 = vpack.c.bf16 %v602_v15, %v598_v14 }
  0xf5   :  { %v401_v55 = vmax.f32 %v397_v38, 0.0  ;;  %v1492_v38 = vpack.c.bf16 %v572_v29, %v568_v26  ;;  %v1494_v46 = vpack.c.bf16 %v571_v40, %v567_v39  ;;  %v606_v26 = vld [vmem:[#allocation2 + $0x648] sm:$0xff]  ;;  %v1510_v36 = vpack.c.bf16 %v603_v25, %v599_v24  ;;  %v631_v14 = vld [vmem:[#allocation2 + $0x710] sm:$0xff] }
  0xf6   :  { %v402_v49 = vmax.f32 %v398_v44, 0.0  ;;  %v370_v54 = vpop.f32.mrb[0].mxu1  ;;  %v580_v44 = vld [vmem:[#allocation2 + $0x578] sm:$0xff]  ;;  %v610_v29 = vld [vmem:[#allocation2 + $0x668] sm:$0xff]  ;;  %v635_v15 = vld [vmem:[#allocation2 + $0x730] sm:$0xff] }
  0xf7   :  { %v1788_v61 = vadd.f32 %v388_v43, %v370_v54  ;;  %v372_v62 = vpop.f32.mrb[1].mxu1  ;;  %v576_v43 = vld [vmem:[#allocation2 + $0x558] sm:$0xff]  ;;  %v586_v54 = vld [vmem:[#allocation2 + $0x5a8] sm:$0xff]  ;;  %v1384_v39 = vpack.c.bf16 %v610_v29, %v606_v26  ;;  %v639_v26 = vld [vmem:[#allocation2 + $0x750] sm:$0xff] }
  0xf8   :  { %747 = vmatprep.mubr.f32.mxu0 %v402_v49  ;;  %889 = vmatprep.mubr.f32.mxu1 %v402_v49  ;;  %v400_v2 = vadd.f32 %v392_v48, %v372_v62  ;;  %v577_v48 = vld [vmem:[#allocation2 + $0x560] sm:$0xff]  ;;  %v1368_v49 = vpack.c.bf16 %v578_v42, %v574_v41  ;;  %v1372_v62 = vpack.c.bf16 %v586_v54, %v582_v53  ;;  %v607_v41 = vld [vmem:[#allocation2 + $0x650] sm:$0xff] }
  0xf9   :  { %748 = vmatmul.mubr.f32.vlgmr.msra.gmra.mrb[2].mxu0 %v401_v55  ;;  %890 = vmatmul.mubr.f32.vlgmr.msra.gmra.mrb[2].mxu1 %v401_v55  ;;  %v584_v55 = vld [vmem:[#allocation2 + $0x598] sm:$0xff]  ;;  %v611_v42 = vld [vmem:[#allocation2 + $0x670] sm:$0xff] }
  0xfa   :  { %1351 = vmatpush1.bf16.msra.mxu0 %v1350_v50  ;;  %1479 = vmatpush1.bf16.msra.mxu1 %v1478_v51  ;;  %v404_v7 = vmax.f32 %v400_v2, 0.0  ;;  %v1496_v50 = vpack.c.bf16 %v580_v44, %v576_v43  ;;  %v575_v51 = vld [vmem:[#allocation2 + $0x550] sm:$0xff]  ;;  %v590_v2 = vld [vmem:[#allocation2 + $0x5c8] sm:$0xff] }
  0xfb   :  { %1353 = vmatprep.subr.bf16.mxu0 %v1352_v56  ;;  %1481 = vmatprep.subr.bf16.mxu1 %v1480_v57  ;;  %v588_v56 = vld [vmem:[#allocation2 + $0x5b8] sm:$0xff]  ;;  %v1370_v57 = vpack.c.bf16 %v577_v48, %v573_v47  ;;  %v1498_v58 = vpack.c.bf16 %v579_v52, %v575_v51  ;;  %v614_v43 = vld [vmem:[#allocation2 + $0x688] sm:$0xff]  ;;  %v1514_v48 = vpack.c.bf16 %v611_v42, %v607_v41  ;;  %v615_v53 = vld [vmem:[#allocation2 + $0x690] sm:$0xff] }
  0xfc   :  { %818 = vmatprep.mubr.f32.mxu0 %v404_v7  ;;  %960 = vmatprep.mubr.f32.mxu1 %v404_v7  ;;  %v1500_v63 = vpack.c.bf16 %v588_v56, %v584_v55  ;;  %v1502_v7 = vpack.c.bf16 %v587_v1, %v583_v0  ;;  %v618_v44 = vld [vmem:[#allocation2 + $0x6a8] sm:$0xff]  ;;  %v619_v54 = vld [vmem:[#allocation2 + $0x6b0] sm:$0xff] }
  0xfd   :  { %v1388_v51 = vpack.c.bf16 %v618_v44, %v614_v43  ;;  %v622_v55 = vld [vmem:[#allocation2 + $0x6c8] sm:$0xff]  ;;  %v1518_v60 = vpack.c.bf16 %v619_v54, %v615_v53  ;;  %v643_v29 = vld [vmem:[#allocation2 + $0x770] sm:$0xff] }
  0xfe   :  { %1355 = vmatpush1.bf16.msra.mxu0 %v1354_v3  ;;  %1483 = vmatpush1.bf16.msra.mxu1 %v1482_v4  ;;  %v594_v3 = vld [vmem:[#allocation2 + $0x5e8] sm:$0xff]  ;;  %v592_v4 = vld [vmem:[#allocation2 + $0x5d8] sm:$0xff]  ;;  %v647_v43 = vld [vmem:[#allocation2 + $0x790] sm:$0xff] }
  0xff   :  { %1357 = vmatprep.subr.bf16.mxu0 %v1356_v8  ;;  %1485 = vmatprep.subr.bf16.mxu1 %v1484_v9  ;;  %v589_v8 = vld [vmem:[#allocation2 + $0x5c0] sm:$0xff]  ;;  %v1376_v10 = vpack.c.bf16 %v594_v3, %v590_v2  ;;  %v1504_v11 = vpack.c.bf16 %v596_v5, %v592_v4  ;;  %v626_v56 = vld [vmem:[#allocation2 + $0x6e8] sm:$0xff]  ;;  %v623_v2 = vld [vmem:[#allocation2 + $0x6d0] sm:$0xff] }
 0x100   :  { %v593_v9 = vld [vmem:[#allocation2 + $0x5e0] sm:$0xff]  ;;  %v1392_v0 = vpack.c.bf16 %v626_v56, %v622_v55  ;;  %v627_v3 = vld [vmem:[#allocation2 + $0x6f0] sm:$0xff]  ;;  %v630_v4 = vld [vmem:[#allocation2 + $0x708] sm:$0xff] }
 0x101   :  { %v1378_v18 = vpack.c.bf16 %v593_v9, %v589_v8  ;;  %v634_v5 = vld [vmem:[#allocation2 + $0x728] sm:$0xff]  ;;  %v1522_v9 = vpack.c.bf16 %v627_v3, %v623_v2  ;;  %v651_v44 = vld [vmem:[#allocation2 + $0x7b0] sm:$0xff] }
 0x102   :  { %1359 = vmatpush1.bf16.msra.mxu0 %v1358_v16  ;;  %1487 = vmatpush1.bf16.msra.mxu1 %v1486_v17  ;;  %v600_v16 = vld [vmem:[#allocation2 + $0x618] sm:$0xff]  ;;  %v1396_v12 = vpack.c.bf16 %v634_v5, %v630_v4  ;;  %v655_v55 = vld [vmem:[#allocation2 + $0x7d0] sm:$0xff]  ;;  %v1003_v4 = vld [vmem:[%s2007_s7 + $0x100] sm:$0xff] }
 0x103   :  { %1361 = vmatprep.subr.bf16.mxu0 %v1360_v20  ;;  %1489 = vmatprep.subr.bf16.mxu1 %v1488_v21  ;;  %v604_v17 = vld [vmem:[#allocation2 + $0x638] sm:$0xff]  ;;  %v597_v20 = vld [vmem:[#allocation2 + $0x600] sm:$0xff]  ;;  %v659_v56 = vld [vmem:[#allocation2 + $0x7f0] sm:$0xff] }
 0x104   :  { %v601_v21 = vld [vmem:[#allocation2 + $0x620] sm:$0xff]  ;;  %v1508_v23 = vpack.c.bf16 %v604_v17, %v600_v16  ;;  %v638_v16 = vld [vmem:[#allocation2 + $0x748] sm:$0xff] }
 0x105   :  { %v1382_v35 = vpack.c.bf16 %v601_v21, %v597_v20  ;;  %v642_v17 = vld [vmem:[#allocation2 + $0x768] sm:$0xff]  ;;  %v1526_v21 = vpack.c.bf16 %v635_v15, %v631_v14  ;;  %v403_v14 = vmax.f32 %v1788_v61, 0.0 }
 0x106   :  { %1363 = vmatpush1.bf16.msra.mxu0 %v1362_v31  ;;  %1491 = vmatpush1.bf16.msra.mxu1 %v1490_v33  ;;  %v608_v31 = vld [vmem:[#allocation2 + $0x658] sm:$0xff]  ;;  %v1400_v24 = vpack.c.bf16 %v642_v17, %v638_v16  ;;  %v1004_v5 = vld [vmem:[%s2007_s7 + $0x108] sm:$0xff]  ;;  %v1005_v17 = vld [vmem:[%s2007_s7 + $0x110] sm:$0xff] }
 0x107   :  { %1365 = vmatprep.subr.bf16.mxu0 %v1364_v37  ;;  %1493 = vmatprep.subr.bf16.mxu1 %v1492_v38  ;;  %v612_v33 = vld [vmem:[#allocation2 + $0x678] sm:$0xff]  ;;  %v605_v37 = vld [vmem:[#allocation2 + $0x640] sm:$0xff]  ;;  %v992_v61 = vld [vmem:[%s2007_s7 + $0xa8] sm:$0xff] }
 0x108   :  { %v609_v38 = vld [vmem:[#allocation2 + $0x660] sm:$0xff]  ;;  %v1512_v40 = vpack.c.bf16 %v612_v33, %v608_v31  ;;  %v646_v31 = vld [vmem:[#allocation2 + $0x788] sm:$0xff] }
 0x109   :  { %v1386_v47 = vpack.c.bf16 %v609_v38, %v605_v37  ;;  %v650_v33 = vld [vmem:[#allocation2 + $0x7a8] sm:$0xff]  ;;  %v1530_v38 = vpack.c.bf16 %v643_v29, %v639_v26 }
 0x10a   :  { %1367 = vmatpush1.bf16.msra.mxu0 %v1366_v45  ;;  %1495 = vmatpush1.bf16.msra.mxu1 %v1494_v46  ;;  %v616_v45 = vld [vmem:[#allocation2 + $0x698] sm:$0xff]  ;;  %v1404_v41 = vpack.c.bf16 %v650_v33, %v646_v31  ;;  %v1007_v31 = vld [vmem:[%s2007_s7 + $0x120] sm:$0xff]  ;;  %v1008_v33 = vld [vmem:[%s2007_s7 + $0x128] sm:$0xff] }
 0x10b   :  { %1369 = vmatprep.subr.bf16.mxu0 %v1368_v49  ;;  %1497 = vmatprep.subr.bf16.mxu1 %v1496_v50  ;;  %v620_v46 = vld [vmem:[#allocation2 + $0x6b8] sm:$0xff]  ;;  %v613_v49 = vld [vmem:[#allocation2 + $0x680] sm:$0xff] }
 0x10c   :  { %v617_v50 = vld [vmem:[#allocation2 + $0x6a0] sm:$0xff]  ;;  %v1516_v52 = vpack.c.bf16 %v620_v46, %v616_v45  ;;  %v654_v45 = vld [vmem:[#allocation2 + $0x7c8] sm:$0xff] }
 0x10d   :  { %v1390_v59 = vpack.c.bf16 %v617_v50, %v613_v49  ;;  %v658_v46 = vld [vmem:[#allocation2 + $0x7e8] sm:$0xff]  ;;  %v1534_v50 = vpack.c.bf16 %v651_v44, %v647_v43 }
 0x10e   :  { %1371 = vmatpush1.bf16.msra.mxu0 %v1370_v57  ;;  %1499 = vmatpush1.bf16.msra.mxu1 %v1498_v58  ;;  %v624_v57 = vld [vmem:[#allocation2 + $0x6d8] sm:$0xff]  ;;  %v1408_v53 = vpack.c.bf16 %v658_v46, %v654_v45  ;;  %v1009_v45 = vld [vmem:[%s2007_s7 + $0x130] sm:$0xff] }
 0x10f   :  { %1373 = vmatprep.subr.bf16.mxu0 %v1372_v62  ;;  %1501 = vmatprep.subr.bf16.mxu1 %v1500_v63  ;;  %v628_v58 = vld [vmem:[#allocation2 + $0x6f8] sm:$0xff]  ;;  %v621_v62 = vld [vmem:[#allocation2 + $0x6c0] sm:$0xff] }
 0x110   :  { %v625_v63 = vld [vmem:[#allocation2 + $0x6e0] sm:$0xff]  ;;  %v1520_v1 = vpack.c.bf16 %v628_v58, %v624_v57  ;;  %v988_v58 = vld [vmem:[%s2007_s7 + $0x88] sm:$0xff]  ;;  %v1010_v46 = vld [vmem:[%s2007_s7 + $0x138] sm:$0xff] }
 0x111   :  { %v1394_v8 = vpack.c.bf16 %v625_v63, %v621_v62  ;;  %v987_v57 = vld [vmem:[%s2007_s7 + $0x80] sm:$0xff]  ;;  %v1538_v63 = vpack.c.bf16 %v659_v56, %v655_v55 }
 0x112   :  { %1375 = vmatpush1.bf16.msra.mxu0 %v1374_v6  ;;  %1503 = vmatpush1.bf16.msra.mxu1 %v1502_v7  ;;  %v632_v6 = vld [vmem:[#allocation2 + $0x718] sm:$0xff]  ;;  %v1540_v2 = vpack.c.bf16 %v988_v58, %v987_v57  ;;  %v1011_v57 = vld [vmem:[%s2007_s7 + $0x140] sm:$0xff]  ;;  %v1012_v58 = vld [vmem:[%s2007_s7 + $0x148] sm:$0xff] }
 0x113   :  { %1377 = vmatprep.subr.bf16.mxu0 %v1376_v10  ;;  %1505 = vmatprep.subr.bf16.mxu1 %v1504_v11  ;;  %v636_v7 = vld [vmem:[#allocation2 + $0x738] sm:$0xff]  ;;  %v629_v10 = vld [vmem:[#allocation2 + $0x700] sm:$0xff] }
 0x114   :  { %v633_v11 = vld [vmem:[#allocation2 + $0x720] sm:$0xff]  ;;  %v1524_v13 = vpack.c.bf16 %v636_v7, %v632_v6  ;;  %v989_v6 = vld [vmem:[%s2007_s7 + $0x90] sm:$0xff]  ;;  %v990_v7 = vld [vmem:[%s2007_s7 + $0x98] sm:$0xff] }
 0x115   :  { %v1398_v20 = vpack.c.bf16 %v633_v11, %v629_v10  ;;  %v1574_v11 = vpack.c.bf16 %v1004_v5, %v1003_v4  ;;  %v1544_v15 = vpack.c.bf16 %v990_v7, %v989_v6  ;;  %v1013_v6 = vld [vmem:[%s2007_s7 + $0x150] sm:$0xff]  ;;  %v1014_v7 = vld [vmem:[%s2007_s7 + $0x158] sm:$0xff] }
 0x116   :  { %1379 = vmatpush1.bf16.msra.mxu0 %v1378_v18  ;;  %1507 = vmatpush1.bf16.msra.mxu1 %v1506_v19  ;;  %v640_v18 = vld [vmem:[#allocation2 + $0x758] sm:$0xff] }
 0x117   :  { %1381 = vmatprep.subr.bf16.mxu0 %v1380_v22  ;;  %1509 = vmatprep.subr.bf16.mxu1 %v1508_v23  ;;  %v644_v19 = vld [vmem:[#allocation2 + $0x778] sm:$0xff]  ;;  %v637_v22 = vld [vmem:[#allocation2 + $0x740] sm:$0xff] }
 0x118   :  { %v641_v23 = vld [vmem:[#allocation2 + $0x760] sm:$0xff]  ;;  %v1528_v25 = vpack.c.bf16 %v644_v19, %v640_v18  ;;  %v1006_v18 = vld [vmem:[%s2007_s7 + $0x118] sm:$0xff] }
 0x119   :  { %v1402_v37 = vpack.c.bf16 %v641_v23, %v637_v22  ;;  %v991_v19 = vld [vmem:[%s2007_s7 + $0xa0] sm:$0xff]  ;;  %v1578_v23 = vpack.c.bf16 %v1006_v18, %v1005_v17  ;;  %v984_v17 = vld [vmem:[%s2007_s7 + $0x68] sm:$0xff] }
 0x11a   :  { %1383 = vmatpush1.bf16.msra.mxu0 %v1382_v35  ;;  %1511 = vmatpush1.bf16.msra.mxu1 %v1510_v36  ;;  %v648_v35 = vld [vmem:[#allocation2 + $0x798] sm:$0xff]  ;;  %v1548_v26 = vpack.c.bf16 %v992_v61, %v991_v19  ;;  %v1015_v18 = vld [vmem:[%s2007_s7 + $0x160] sm:$0xff]  ;;  %v1016_v61 = vld [vmem:[%s2007_s7 + $0x168] sm:$0xff] }
 0x11b   :  { %1385 = vmatprep.subr.bf16.mxu0 %v1384_v39  ;;  %1513 = vmatprep.subr.bf16.mxu1 %v1512_v40  ;;  %v652_v36 = vld [vmem:[#allocation2 + $0x7b8] sm:$0xff]  ;;  %v645_v39 = vld [vmem:[#allocation2 + $0x780] sm:$0xff] }
 0x11c   :  { %v649_v40 = vld [vmem:[#allocation2 + $0x7a0] sm:$0xff]  ;;  %v1532_v42 = vpack.c.bf16 %v652_v36, %v648_v35  ;;  %v993_v35 = vld [vmem:[%s2007_s7 + $0xb0] sm:$0xff]  ;;  %v994_v36 = vld [vmem:[%s2007_s7 + $0xb8] sm:$0xff] }
 0x11d   :  { %v1406_v49 = vpack.c.bf16 %v649_v40, %v645_v39  ;;  %v1582_v40 = vpack.c.bf16 %v1008_v33, %v1007_v31  ;;  %v1552_v43 = vpack.c.bf16 %v994_v36, %v993_v35  ;;  %v1017_v35 = vld [vmem:[%s2007_s7 + $0x170] sm:$0xff]  ;;  %v1018_v36 = vld [vmem:[%s2007_s7 + $0x178] sm:$0xff] }
 0x11e   :  { %1387 = vmatpush1.bf16.msra.mxu0 %v1386_v47  ;;  %1515 = vmatpush1.bf16.msra.mxu1 %v1514_v48  ;;  %v656_v47 = vld [vmem:[#allocation2 + $0x7d8] sm:$0xff] }
 0x11f   :  { %1389 = vmatprep.subr.bf16.mxu0 %v1388_v51  ;;  %1517 = vmatprep.subr.bf16.mxu1 %v1516_v52  ;;  %v660_v48 = vld [vmem:[#allocation2 + $0x7f8] sm:$0xff]  ;;  %v653_v51 = vld [vmem:[#allocation2 + $0x7c0] sm:$0xff] }
 0x120   :  { %v657_v52 = vld [vmem:[#allocation2 + $0x7e0] sm:$0xff]  ;;  %v1536_v54 = vpack.c.bf16 %v660_v48, %v656_v47  ;;  %v996_v48 = vld [vmem:[%s2007_s7 + $0xc8] sm:$0xff] }
 0x121   :  { %v1410_v62 = vpack.c.bf16 %v657_v52, %v653_v51  ;;  %v995_v47 = vld [vmem:[%s2007_s7 + $0xc0] sm:$0xff]  ;;  %v1586_v52 = vpack.c.bf16 %v1010_v46, %v1009_v45 }
 0x122   :  { %1391 = vmatpush1.bf16.msra.mxu0 %v1390_v59  ;;  %1519 = vmatpush1.bf16.msra.mxu1 %v1518_v60  ;;  %v1019_v59 = vld [vmem:[%s2007_s7 + $0x180] sm:$0xff]  ;;  %v1020_v60 = vld [vmem:[%s2007_s7 + $0x188] sm:$0xff]  ;;  %v1556_v55 = vpack.c.bf16 %v996_v48, %v995_v47 }
 0x123   :  { %1393 = vmatprep.subr.bf16.mxu0 %v1392_v0  ;;  %1521 = vmatprep.subr.bf16.mxu1 %v1520_v1  ;;  %v971_v0 = vld [vmem:[%s2007_s7] sm:$0xff]  ;;  %v972_v1 = vld [vmem:[%s2007_s7 + $0x8] sm:$0xff]  ;;  %v1572_v3 = vpack.c.bf16 %v1020_v60, %v1019_v59  ;;  %v997_v59 = vld [vmem:[%s2007_s7 + $0xd0] sm:$0xff] }
 0x124   :  { %v1542_v10 = vpack.c.bf16 %v972_v1, %v971_v0  ;;  %v998_v60 = vld [vmem:[%s2007_s7 + $0xd8] sm:$0xff]  ;;  %v1590_v1 = vpack.c.bf16 %v1012_v58, %v1011_v57 }
 0x125   :  { %v1560_v4 = vpack.c.bf16 %v998_v60, %v997_v59 }
 0x126   :  { %1395 = vmatpush1.bf16.msra.mxu0 %v1394_v8  ;;  %1523 = vmatpush1.bf16.msra.mxu1 %v1522_v9  ;;  %v1021_v8 = vld [vmem:[%s2007_s7 + $0x190] sm:$0xff]  ;;  %v1022_v9 = vld [vmem:[%s2007_s7 + $0x198] sm:$0xff] }
 0x127   :  { %1397 = vmatprep.subr.bf16.mxu0 %v1396_v12  ;;  %1525 = vmatprep.subr.bf16.mxu1 %v1524_v13  ;;  %v973_v12 = vld [vmem:[%s2007_s7 + $0x10] sm:$0xff]  ;;  %v974_v13 = vld [vmem:[%s2007_s7 + $0x18] sm:$0xff]  ;;  %v1576_v16 = vpack.c.bf16 %v1022_v9, %v1021_v8  ;;  %v999_v8 = vld [vmem:[%s2007_s7 + $0xe0] sm:$0xff] }
 0x128   :  { %v1546_v22 = vpack.c.bf16 %v974_v13, %v973_v12  ;;  %v1000_v9 = vld [vmem:[%s2007_s7 + $0xe8] sm:$0xff]  ;;  %v1594_v13 = vpack.c.bf16 %v1014_v7, %v1013_v6 }
 0x12a   :  { %1399 = vmatpush1.bf16.msra.mxu0 %v1398_v20  ;;  %1527 = vmatpush1.bf16.msra.mxu1 %v1526_v21  ;;  %v1023_v20 = vld [vmem:[%s2007_s7 + $0x1a0] sm:$0xff]  ;;  %v1024_v21 = vld [vmem:[%s2007_s7 + $0x1a8] sm:$0xff] }
 0x12b   :  { %1401 = vmatprep.subr.bf16.mxu0 %v1400_v24  ;;  %1529 = vmatprep.subr.bf16.mxu1 %v1528_v25  ;;  %v975_v24 = vld [vmem:[%s2007_s7 + $0x20] sm:$0xff]  ;;  %v976_v25 = vld [vmem:[%s2007_s7 + $0x28] sm:$0xff]  ;;  %v1580_v29 = vpack.c.bf16 %v1024_v21, %v1023_v20  ;;  %v1598_v20 = vpack.c.bf16 %v1016_v61, %v1015_v18  ;;  %v1001_v21 = vld [vmem:[%s2007_s7 + $0xf0] sm:$0xff] }
 0x12c   :  { %v1550_v39 = vpack.c.bf16 %v976_v25, %v975_v24  ;;  %v1034_v25 = vld [vmem:[%s2007_s7 + $0x1f8] sm:$0xff] }
 0x12e   :  { %1403 = vmatpush1.bf16.msra.mxu0 %v1402_v37  ;;  %1531 = vmatpush1.bf16.msra.mxu1 %v1530_v38  ;;  %v1025_v37 = vld [vmem:[%s2007_s7 + $0x1b0] sm:$0xff]  ;;  %v1026_v38 = vld [vmem:[%s2007_s7 + $0x1b8] sm:$0xff] }
 0x12f   :  { %1405 = vmatprep.subr.bf16.mxu0 %v1404_v41  ;;  %1533 = vmatprep.subr.bf16.mxu1 %v1532_v42  ;;  %v977_v41 = vld [vmem:[%s2007_s7 + $0x30] sm:$0xff]  ;;  %v978_v42 = vld [vmem:[%s2007_s7 + $0x38] sm:$0xff]  ;;  %v1584_v44 = vpack.c.bf16 %v1026_v38, %v1025_v37  ;;  %v1602_v37 = vpack.c.bf16 %v1018_v36, %v1017_v35  ;;  %v661_v38 = vld [vmem:[%s2006_s6] sm:$0xf] }
 0x130   :  { %v1554_v51 = vpack.c.bf16 %v978_v42, %v977_v41  ;;  %v670_v41 = vrot.slane %v661_v38, %v383_v30  ;;  %v678_v42 = vrot.slane %v661_v38, %v391_v34 }
 0x132   :  { %1407 = vmatpush1.bf16.msra.mxu0 %v1406_v49  ;;  %1535 = vmatpush1.bf16.msra.mxu1 %v1534_v50  ;;  %v1027_v49 = vld [vmem:[%s2007_s7 + $0x1c0] sm:$0xff]  ;;  %v1028_v50 = vld [vmem:[%s2007_s7 + $0x1c8] sm:$0xff] }
 0x133   :  { %1409 = vmatprep.subr.bf16.mxu0 %v1408_v53  ;;  %1537 = vmatprep.subr.bf16.mxu1 %v1536_v54  ;;  %v979_v53 = vld [vmem:[%s2007_s7 + $0x40] sm:$0xff]  ;;  %v980_v54 = vld [vmem:[%s2007_s7 + $0x48] sm:$0xff]  ;;  %v1588_v56 = vpack.c.bf16 %v1028_v50, %v1027_v49 }
 0x134   :  { %v1558_v0 = vpack.c.bf16 %v980_v54, %v979_v53 }
 0x136   :  { %1411 = vmatpush1.bf16.msra.mxu0 %v1410_v62  ;;  %1539 = vmatpush1.bf16.msra.mxu1 %v1538_v63  ;;  %v1029_v62 = vld [vmem:[%s2007_s7 + $0x1d0] sm:$0xff]  ;;  %v1030_v63 = vld [vmem:[%s2007_s7 + $0x1d8] sm:$0xff] }
 0x137   :  { %1541 = vmatprep.subr.bf16.mxu0 %v1540_v2  ;;  %1573 = vmatprep.subr.bf16.mxu1 %v1572_v3  ;;  %v981_v2 = vld [vmem:[%s2007_s7 + $0x50] sm:$0xff]  ;;  %v982_v3 = vld [vmem:[%s2007_s7 + $0x58] sm:$0xff]  ;;  %v1592_v5 = vpack.c.bf16 %v1030_v63, %v1029_v62 }
 0x138   :  { %v1562_v12 = vpack.c.bf16 %v982_v3, %v981_v2 }
 0x139   :  { %819 = vmatmul.mubr.f32.vlgmr.msra.gmra.mrb[2].mxu0 %v403_v14  ;;  %961 = vmatmul.mubr.f32.vlgmr.msra.gmra.mrb[2].mxu1 %v403_v14  ;;  %v1564_v14 = vpack.c.bf16 %v1000_v9, %v999_v8 }
 0x13a   :  { %1543 = vmatpush3.bf16.msra.mxu0 %v1542_v10  ;;  %1575 = vmatpush3.bf16.msra.mxu1 %v1574_v11  ;;  %v1031_v10 = vld [vmem:[%s2007_s7 + $0x1e0] sm:$0xff]  ;;  %v1032_v11 = vld [vmem:[%s2007_s7 + $0x1e8] sm:$0xff] }
 0x13b   :  { %1545 = vmatprep.subr.bf16.mxu0 %v1544_v15  ;;  %1577 = vmatprep.subr.bf16.mxu1 %v1576_v16  ;;  %v1596_v15 = vpack.c.bf16 %v1032_v11, %v1031_v10  ;;  %v983_v16 = vld [vmem:[%s2007_s7 + $0x60] sm:$0xff] }
 0x13c   :  { %v1566_v19 = vpack.c.bf16 %v984_v17, %v983_v16 }
 0x13e   :  { %1547 = vmatpush3.bf16.msra.mxu0 %v1546_v22  ;;  %1579 = vmatpush3.bf16.msra.mxu1 %v1578_v23  ;;  %v1002_v22 = vld [vmem:[%s2007_s7 + $0xf8] sm:$0xff]  ;;  %v1033_v23 = vld [vmem:[%s2007_s7 + $0x1f0] sm:$0xff] }
 0x13f   :  { %1549 = vmatprep.subr.bf16.mxu0 %v1548_v26  ;;  %1581 = vmatprep.subr.bf16.mxu1 %v1580_v29  ;;  %v1568_v24 = vpack.c.bf16 %v1002_v22, %v1001_v21  ;;  %v985_v26 = vld [vmem:[%s2007_s7 + $0x70] sm:$0xff]  ;;  %v986_v29 = vld [vmem:[%s2007_s7 + $0x78] sm:$0xff]  ;;  %v1600_v31 = vpack.c.bf16 %v1034_v25, %v1033_v23 }
 0x140   :  { %v1570_v33 = vpack.c.bf16 %v986_v29, %v985_v26 }
 0x142   :  { %1551 = vmatpush3.bf16.msra.mxu0 %v1550_v39  ;;  %1583 = vmatpush3.bf16.msra.mxu1 %v1582_v40  ;;  %v666_v39 = vrot.slane %v661_v38, %v379_v28  ;;  %v674_v40 = vrot.slane %v661_v38, %v387_v32 }
 0x143   :  { %1553 = vmatprep.subr.bf16.mxu0 %v1552_v43  ;;  %1585 = vmatprep.subr.bf16.mxu1 %v1584_v44 }
 0x146   :  { %1555 = vmatpush3.bf16.msra.mxu0 %v1554_v51  ;;  %1587 = vmatpush3.bf16.msra.mxu1 %v1586_v52 }
 0x147   :  { %1557 = vmatprep.subr.bf16.mxu0 %v1556_v55  ;;  %1589 = vmatprep.subr.bf16.mxu1 %v1588_v56 }
 0x14a   :  { %1559 = vmatpush3.bf16.msra.mxu0 %v1558_v0  ;;  %1591 = vmatpush3.bf16.msra.mxu1 %v1590_v1 }
 0x14b   :  { %1561 = vmatprep.subr.bf16.mxu0 %v1560_v4  ;;  %1593 = vmatprep.subr.bf16.mxu1 %v1592_v5 }
 0x14e   :  { %1563 = vmatpush3.bf16.msra.mxu0 %v1562_v12  ;;  %1595 = vmatpush3.bf16.msra.mxu1 %v1594_v13 }
 0x14f   :  { %1565 = vmatprep.subr.bf16.mxu0 %v1564_v14  ;;  %1597 = vmatprep.subr.bf16.mxu1 %v1596_v15 }
 0x152   :  { %1567 = vmatpush3.bf16.msra.mxu0 %v1566_v19  ;;  %1599 = vmatpush3.bf16.msra.mxu1 %v1598_v20 }
 0x153   :  { %1569 = vmatprep.subr.bf16.mxu0 %v1568_v24  ;;  %1601 = vmatprep.subr.bf16.mxu1 %v1600_v31 }
 0x156   :  { %1571 = vmatpush3.bf16.msra.mxu0 %v1570_v33  ;;  %1603 = vmatpush3.bf16.msra.mxu1 %v1602_v37 }
 0x20c   :  { %v820_v43 = vpop.f32.mrb[2].mxu0  ;;  %v962_v44 = vpop.f32.mrb[2].mxu1 }
 0x20d   :  { %v1604_v45 = vadd.f32 %v820_v43, %v666_v39  ;;  %v1606_v46 = vadd.f32 %v962_v44, %v674_v40  ;;  %v822_v47 = vpop.f32.mrb[3].mxu0  ;;  %v964_v48 = vpop.f32.mrb[3].mxu1 }
 0x20e   :  { %v1605_v49 = vadd.f32 %v822_v47, %v670_v41  ;;  %v1607_v50 = vadd.f32 %v964_v48, %v678_v42 }
 0x20f   :  { %v967_v28 = vmax.f32 %v1604_v45, 0.0  ;;  %v969_v53 = vmax.f32 %v1606_v46, 0.0 }
 0x210   :  { %v968_v51 = vmax.f32 %v1605_v49, 0.0  ;;  %v970_v52 = vmax.f32 %v1607_v50, 0.0 }
 0x212   :  { %1106 = vmatprep.mubr.f32.mxu0 %v968_v51  ;;  %1176 = vmatprep.mubr.f32.mxu1 %v970_v52 }
 0x213   :  { %1107 = vmatmul.mubr.f32.vlgmr.msra.gmra.mrb[4].mxu0 %v967_v28  ;;  %1177 = vmatmul.mubr.f32.vlgmr.msra.gmra.mrb[4].mxu1 %v969_v53 }
 0x2e6   :  { %v1234_v30 = vpop.f32.mrb[4].mxu0  ;;  %v1269_v32 = vpop.f32.mrb[4].mxu1 }
 0x2e7   :  { %v1235_v34 = vpop.f32.mrb[5].mxu0  ;;  %v1270_v54 = vpop.f32.mrb[5].mxu1 }
 0x2e8   :  { %v1236_v55 = vadd.f32 %v1235_v34, %v1234_v30  ;;  %v1271_v56 = vadd.f32 %v1270_v54, %v1269_v32 }
 0x2ea   :  { %v1109_v57 = vadd.f32 %v1236_v55, %v1201_v27 }
 0x2ec   :  { %v1179_v58 = vadd.f32 %v1271_v56, %v1109_v57 }
 0x2ee   :  { %1183 = vst.msk [vmem:[%s2009_s9] sm:$0x3] %vm1182_vm5, %v1179_v58 }
 0x2ef   :  { %1188 = vsyncpa [#allocation3], 1 }

</bundles_post_ra>
